<compile_context>
chip_gen: v7x
topology: tpu7x:2x2x1
jax: 0.10.0
libtpu: 0.0.40
codegen_flags: <defaults>
</compile_context>

<pallas_src>
import functools

import jax
import jax.numpy as jnp
from jax import lax
from jax.experimental import pallas as pl
from jax.experimental.pallas import tpu as pltpu

_LANE = 128


def _layernorm2d_kernel(x_ref, w_ref, b_ref, o_ref, *, inv_d, eps, row_chunk):
    # x_ref/o_ref: (TN, R, L);  w_ref/b_ref: (R, L)
    tn, r, l = x_ref.shape
    inv_d = jnp.float32(inv_d)
    eps = jnp.float32(eps)

    def _psum(v):
        # Per-sample sum over (rows, lanes) -> (TN, 1, 1); two chained
        # single-axis reductions (lane reduce on XLU, then sublane reduce).
        return jnp.sum(jnp.sum(v, axis=2, keepdims=True), axis=1, keepdims=True)

    n_full = r // row_chunk
    tail = r - n_full * row_chunk
    unroll = True if n_full <= 16 else 8

    def _reduce_rows(chunk_fn):
        # Accumulate chunk_fn(start, size) over row chunks; bounds vreg live
        # ranges by re-reading x_ref per chunk instead of keeping the whole
        # f32 tile live.
        acc = jnp.zeros((tn, 1, 1), jnp.float32)
        if n_full > 0:
            def body(c, a):
                start = pl.multiple_of(c * row_chunk, row_chunk)
                return a + chunk_fn(start, row_chunk)
            acc = lax.fori_loop(0, n_full, body, acc, unroll=unroll)
        if tail:
            acc = acc + chunk_fn(n_full * row_chunk, tail)
        return acc

    # Pass 1: per-sample mean.
    def _sum_chunk(start, size):
        xs = x_ref[:, pl.ds(start, size), :].astype(jnp.float32)
        return _psum(xs)

    mean = _reduce_rows(_sum_chunk) * inv_d

    # Pass 2: per-sample variance (two-pass; biased, like PyTorch layer_norm).
    def _var_chunk(start, size):
        xc = x_ref[:, pl.ds(start, size), :].astype(jnp.float32) - mean
        return _psum(xc * xc)

    var = _reduce_rows(_var_chunk) * inv_d
    inv_std = lax.rsqrt(var + eps)

    # Pass 3: normalize + affine, row-chunked re-reads -> streaming stores.
    def _norm_chunk(start, size):
        sl = pl.ds(start, size)
        xc = x_ref[:, sl, :].astype(jnp.float32) - mean
        w = w_ref[sl, :].astype(jnp.float32)[None]
        b = b_ref[sl, :].astype(jnp.float32)[None]
        o_ref[:, sl, :] = (xc * inv_std * w + b).astype(o_ref.dtype)

    if n_full > 0:
        def norm_body(c, carry):
            start = pl.multiple_of(c * row_chunk, row_chunk)
            _norm_chunk(start, row_chunk)
            return carry
        lax.fori_loop(0, n_full, norm_body, 0, unroll=unroll)
    if tail:
        _norm_chunk(n_full * row_chunk, tail)


def _pick_tn(n, bytes_per_sample):
    """Samples per grid step: ~1 MiB DMAs, <=16 MiB working set, >=2 steps/TC."""
    target_dma = 1 << 20
    vmem_budget = 16 << 20          # double-buffered x + out blocks
    tn = max(1, target_dma // bytes_per_sample)
    tn = min(tn, max(1, vmem_budget // (4 * bytes_per_sample)))
    min_steps = 4 if n >= 4 else n  # keep both v7x TCs fed and pipelined
    tn = min(tn, max(1, n // max(min_steps, 1)))
    tn = max(1, min(tn, n))
    while n % tn:                   # exact grid: no masked edge blocks
        tn -= 1
    return tn


def layernorm2d(x, weight, bias, eps=1e-5):
    """x: (N, C, H, W); weight, bias: (C, H, W). Returns (N, C, H, W)."""
    N, C, H, W = x.shape
    D = C * H * W
    if D % _LANE == 0:
        R, L = D // _LANE, _LANE    # lane-dense (R, 128) per-sample tiles
    else:
        # Pad/slice-free fallback: block == full dims, so no 128-divisibility
        # requirement; sublane under-packing is hidden under HBM time.
        R, L = 1, D

    x3 = x.reshape(N, R, L)         # free bitcast reshapes (no jnp.pad, no slice)
    w3 = weight.reshape(R, L)
    b3 = bias.reshape(R, L)

    itemsize = jnp.dtype(x.dtype).itemsize
    bytes_per_sample = R * L * itemsize
    tn = _pick_tn(N, bytes_per_sample)

    # Row chunk for the in-kernel passes: keep ~tn*row_chunk*128 f32 elements
    # live at a time (well under the 64-vreg file); multiple of the packed
    # sublane tile for sub-32-bit dtypes.
    sub = 8 * max(1, 4 // itemsize)
    row_chunk = max(sub, min(128, (512 // tn) // sub * sub))

    # VMEM: double-buffered x/out blocks + (double-buffered) resident w/b,
    # with headroom; capped at 64 MiB so it is also valid on v7x.
    wb_itemsize = jnp.dtype(weight.dtype).itemsize
    need = 4 * tn * R * L * itemsize + 4 * R * L * wb_itemsize
    vmem_limit = int(min(max(need * 3 // 2, 32 << 20), 64 << 20))

    kernel = functools.partial(
        _layernorm2d_kernel,
        inv_d=1.0 / float(D), eps=float(eps), row_chunk=int(row_chunk))

    out = pl.pallas_call(
        kernel,
        out_shape=jax.ShapeDtypeStruct((N, R, L), x.dtype),
        grid=(N // tn,),
        in_specs=[
            pl.BlockSpec((tn, R, L), lambda i: (i, 0, 0)),   # TN samples / step
            pl.BlockSpec((R, L), lambda i: (0, 0)),          # weight: resident
            pl.BlockSpec((R, L), lambda i: (0, 0)),          # bias:   resident
        ],
        out_specs=pl.BlockSpec((tn, R, L), lambda i: (i, 0, 0)),
        compiler_params=pltpu.CompilerParams(
            dimension_semantics=("parallel",),
            vmem_limit_bytes=vmem_limit,
        ),
    )(x3, w3, b3)

    return out.reshape(N, C, H, W)


def layernorm2d_ref(x, weight, bias, eps=1e-5):
    # Pure-JAX reference mirroring torch layer_norm over shape[1:].
    N = x.shape[0]
    xf = x.reshape(N, -1).astype(jnp.float32)
    mean = jnp.mean(xf, axis=-1, keepdims=True)
    var = jnp.mean((xf - mean) ** 2, axis=-1, keepdims=True)
    y = (xf - mean) / jnp.sqrt(var + eps)
    y = y.reshape(x.shape) * weight[None].astype(jnp.float32) + bias[None].astype(jnp.float32)
    return y.astype(x.dtype)


if __name__ == "__main__":
    key = jax.random.PRNGKey(0)
    k1, k2, k3 = jax.random.split(key, 3)

    # Main case: D % 128 == 0 (pure bitcast reshapes, no pad/slice), affine as
    # the module's init_affine would create it (ones / zeros).
    N, C, H, W = 2, 4, 16, 16
    x = jax.random.normal(k1, (N, C, H, W), dtype=jnp.float32)
    weight = jnp.ones((C, H, W), dtype=jnp.float32)
    bias = jnp.zeros((C, H, W), dtype=jnp.float32)

    out = jax.block_until_ready(layernorm2d(x, weight, bias, eps=1e-5))
    ref = layernorm2d_ref(x, weight, bias, eps=1e-5)
    assert out.shape == (N, C, H, W)
    assert jnp.allclose(out, ref, atol=1e-5, rtol=1e-5), "mismatch vs reference"

    # Secondary case: non-trivial affine + D % 128 != 0 (pad/slice-free fallback).
    x2 = jax.random.normal(k2, (2, 3, 8, 8), dtype=jnp.float32)          # D = 192
    w2 = 1.0 + 0.1 * jax.random.normal(k3, (3, 8, 8), dtype=jnp.float32)
    b2 = 0.01 * jnp.arange(3 * 8 * 8, dtype=jnp.float32).reshape(3, 8, 8)
    out2 = jax.block_until_ready(layernorm2d(x2, w2, b2, eps=1e-5))
    ref2 = layernorm2d_ref(x2, w2, b2, eps=1e-5)
    assert jnp.allclose(out2, ref2, atol=1e-5, rtol=1e-5), "mismatch vs reference (fallback)"

    print("KERNEL_OK")
</pallas_src>

<mosaic_0001>
module attributes {stable_mosaic.version = 11 : i64} {
  func.func @_layernorm2d_kernel(%arg0: i32, %arg1: memref<1x8x128xf32, #tpu.memory_space<vmem>>, %arg2: memref<8x128xf32, #tpu.memory_space<vmem>>, %arg3: memref<8x128xf32, #tpu.memory_space<vmem>>, %arg4: memref<1x8x128xf32, #tpu.memory_space<vmem>>) attributes {dimension_semantics = [#tpu.dimension_semantics<parallel>], iteration_bounds = array<i64: 2>, scalar_prefetch = 0 : i64, scratch_operands = 0 : i64, tpu.core_type = #tpu.core_type<tc>, window_params = [{transform_indices = @transform_0, window_bounds = array<i64: 1, 8, 128>}, {pipeline_mode = #tpu.pipeline_mode<synchronous>, transform_indices = @transform_1, window_bounds = array<i64: 8, 128>}, {pipeline_mode = #tpu.pipeline_mode<synchronous>, transform_indices = @transform_2, window_bounds = array<i64: 8, 128>}, {transform_indices = @transform_3, window_bounds = array<i64: 1, 8, 128>}]} {
    %cst = arith.constant 0.000000e+00 : f32
    %0 = vector.broadcast %cst : f32 to vector<1x1x1xf32>
    %c0 = arith.constant 0 : index
    %c0_0 = arith.constant 0 : index
    %c0_1 = arith.constant 0 : index
    %1 = vector.load %arg1[%c0, %c0_0, %c0_1] : memref<1x8x128xf32, #tpu.memory_space<vmem>>, vector<1x8x128xf32>
    %cst_2 = arith.constant dense<0.000000e+00> : vector<1x8xf32>
    %2 = vector.multi_reduction <add>, %1, %cst_2 [2] : vector<1x8x128xf32> to vector<1x8xf32>
    %3 = vector.shape_cast %2 : vector<1x8xf32> to vector<1x8x1xf32>
    %cst_3 = arith.constant dense<0.000000e+00> : vector<1x1xf32>
    %4 = vector.multi_reduction <add>, %3, %cst_3 [1] : vector<1x8x1xf32> to vector<1x1xf32>
    %5 = vector.shape_cast %4 : vector<1x1xf32> to vector<1x1x1xf32>
    %6 = arith.addf %0, %5 : vector<1x1x1xf32>
    %cst_4 = arith.constant 9.765625E-4 : f32
    %7 = vector.broadcast %cst_4 : f32 to vector<1x1x1xf32>
    %8 = arith.mulf %6, %7 : vector<1x1x1xf32>
    %cst_5 = arith.constant 0.000000e+00 : f32
    %9 = vector.broadcast %cst_5 : f32 to vector<1x1x1xf32>
    %c0_6 = arith.constant 0 : index
    %c0_7 = arith.constant 0 : index
    %c0_8 = arith.constant 0 : index
    %10 = vector.load %arg1[%c0_6, %c0_7, %c0_8] : memref<1x8x128xf32, #tpu.memory_space<vmem>>, vector<1x8x128xf32>
    %11 = vector.broadcast %8 : vector<1x1x1xf32> to vector<1x8x128xf32>
    %12 = arith.subf %10, %11 : vector<1x8x128xf32>
    %13 = arith.mulf %12, %12 : vector<1x8x128xf32>
    %cst_9 = arith.constant dense<0.000000e+00> : vector<1x8xf32>
    %14 = vector.multi_reduction <add>, %13, %cst_9 [2] : vector<1x8x128xf32> to vector<1x8xf32>
    %15 = vector.shape_cast %14 : vector<1x8xf32> to vector<1x8x1xf32>
    %cst_10 = arith.constant dense<0.000000e+00> : vector<1x1xf32>
    %16 = vector.multi_reduction <add>, %15, %cst_10 [1] : vector<1x8x1xf32> to vector<1x1xf32>
    %17 = vector.shape_cast %16 : vector<1x1xf32> to vector<1x1x1xf32>
    %18 = arith.addf %9, %17 : vector<1x1x1xf32>
    %cst_11 = arith.constant 9.765625E-4 : f32
    %19 = vector.broadcast %cst_11 : f32 to vector<1x1x1xf32>
    %20 = arith.mulf %18, %19 : vector<1x1x1xf32>
    %cst_12 = arith.constant 9.99999974E-6 : f32
    %21 = vector.broadcast %cst_12 : f32 to vector<1x1x1xf32>
    %22 = arith.addf %20, %21 : vector<1x1x1xf32>
    %23 = math.rsqrt %22 : vector<1x1x1xf32>
    %c0_13 = arith.constant 0 : index
    %c0_14 = arith.constant 0 : index
    %c0_15 = arith.constant 0 : index
    %24 = vector.load %arg1[%c0_13, %c0_14, %c0_15] : memref<1x8x128xf32, #tpu.memory_space<vmem>>, vector<1x8x128xf32>
    %25 = vector.broadcast %8 : vector<1x1x1xf32> to vector<1x8x128xf32>
    %26 = arith.subf %24, %25 : vector<1x8x128xf32>
    %c0_16 = arith.constant 0 : index
    %c0_17 = arith.constant 0 : index
    %27 = vector.load %arg2[%c0_16, %c0_17] : memref<8x128xf32, #tpu.memory_space<vmem>>, vector<8x128xf32>
    %28 = vector.shape_cast %27 : vector<8x128xf32> to vector<1x8x128xf32>
    %c0_18 = arith.constant 0 : index
    %c0_19 = arith.constant 0 : index
    %29 = vector.load %arg3[%c0_18, %c0_19] : memref<8x128xf32, #tpu.memory_space<vmem>>, vector<8x128xf32>
    %30 = vector.shape_cast %29 : vector<8x128xf32> to vector<1x8x128xf32>
    %31 = vector.broadcast %23 : vector<1x1x1xf32> to vector<1x8x128xf32>
    %32 = arith.mulf %26, %31 : vector<1x8x128xf32>
    %33 = arith.mulf %32, %28 : vector<1x8x128xf32>
    %34 = arith.addf %33, %30 : vector<1x8x128xf32>
    %c0_20 = arith.constant 0 : index
    %c0_21 = arith.constant 0 : index
    %c0_22 = arith.constant 0 : index
    %35 = vector.load %arg4[%c0_20, %c0_21, %c0_22] : memref<1x8x128xf32, #tpu.memory_space<vmem>>, vector<1x8x128xf32>
    tpu.vector_store %arg4[%c0_20, %c0_21, %c0_22], %34 {strides = array<i32>} : memref<1x8x128xf32, #tpu.memory_space<vmem>>, vector<1x8x128xf32>,
    return
  }
  func.func @transform_0(%arg0: i32) -> (i32, i32, i32) {
    %c0_i32 = arith.constant 0 : i32
    %c0_i32_0 = arith.constant 0 : i32
    %c0_i32_1 = arith.constant 0 : i32
    return %arg0, %c0_i32, %c0_i32_0 : i32, i32, i32
  }
  func.func @transform_1(%arg0: i32) -> (i32, i32) {
    %c0_i32 = arith.constant 0 : i32
    %c0_i32_0 = arith.constant 0 : i32
    %c0_i32_1 = arith.constant 0 : i32
    return %c0_i32, %c0_i32_0 : i32, i32
  }
  func.func @transform_2(%arg0: i32) -> (i32, i32) {
    %c0_i32 = arith.constant 0 : i32
    %c0_i32_0 = arith.constant 0 : i32
    %c0_i32_1 = arith.constant 0 : i32
    return %c0_i32, %c0_i32_0 : i32, i32
  }
  func.func @transform_3(%arg0: i32) -> (i32, i32, i32) {
    %c0_i32 = arith.constant 0 : i32
    %c0_i32_0 = arith.constant 0 : i32
    %c0_i32_1 = arith.constant 0 : i32
    return %arg0, %c0_i32, %c0_i32_0 : i32, i32, i32
  }
}

</mosaic_0001>

<bundles_post_ra>
// kernel: tpu_custom_call.1
= control target key start
LH: loop header
LB: loop body
LE: loop exit
PB: predicated region body
PF: predicated region fallthrough
CT: control target
= control target key end

     0   :  { %8 = vsyncpa [#allocation3], 0  ;;  %s841_s0 = inlined_call_operand.hbm [shape: f32[2,8,128], index: 0, kind: input, shape index: {}]   ;;  %s842_s1 = inlined_call_operand.hbm [shape: f32[8,128], index: 1, kind: input, shape index: {}]   ;;  %s843_s2 = inlined_call_operand.hbm [shape: f32[8,128], index: 2, kind: input, shape index: {}]   ;;  %s844_s3 = inlined_call_operand.hbm [shape: f32[2,8,128], index: 3, kind: output, shape index: {}]  }
   0x1   :  { %10 = vsyncpa [#allocation3 + $0x1], 0 }
   0x2   :  { %11 = vsyncpa [#allocation6], 0 }
   0x3   :  { %12 = vsyncpa [#allocation4], 0 }
   0x4   :  { %14 = vsyncpa [#allocation4 + $0x1], 0  ;;  %s612_s12 = smov 0   ;;  %s614_s13 = smov 0  }
   0x5   :  { %s616_s14 = smov 0   ;;  %s618_s15 = smov 0  }
   0x6 LB: > { %s633_s16 = sadd.s32 4294967295, %s586_s15   ;;  %s345_s17 = sadd.s32 4294967294, %s586_s15   ;;  %s586_s15 = sphi %s618_s15, %s864_s15   ;;  %s582_s14 = sphi %s616_s14, %s863_s14   ;;  %s578_s13 = sphi %s614_s13, %s862_s13   ;;  %s574_s12 = sphi %s612_s12, %s861_s12  }
   0x7   : > { %p40_p0 = scmp.ne.s32.totalorder %s578_s13, %s574_s12  ;;  %p845_p1 = scmp.eq.s32.totalorder %s633_s16, 0 }
   0x8   : > { %p112_p3 = scmp.eq.s32.totalorder %s345_s17, 1  ;;  %p346_p5 = scmp.ge.s32.totalorder %s586_s15, 1 }
   0x9   : > { %p642_p4 = por %p845_p1, %p40_p0  ;;  %p119_p7 = scmp.lt.s32.totalorder %s586_s15, 3 }
   0xa   : > { %p647_p6 = por %p112_p3, %p40_p0  ;;  %s588_s21 = smov [#allocation5]  }
   0xb   : > { %s848_s18 = scalar_select %p642_p4, 1, 0 }
   0xc   : > { %s849_s19 = scalar_select %p647_p6, 1, 0 }
   0xd   : > { %p652_p8 = pnand %p346_p5, %p119_p7  ;;  %s132_s22 = sshll.u32 %s588_s21, 4  ;;  %s133_s22 = int_to_ptr.vmem [resolvable:$true] %s132_s22 }
   0xe   : > { %s589_s23 = smov [#allocation7]   ;;  %s668_s26 = sadd.s32 1, %s586_s15  }
   0xf   : > { %s850_s20 = scalar_select %p652_p8, 1, 0 }
  0x10   : > { %p373_p10 = pneg %p652_p8  ;;  %s143_s24 = sshll.u32 %s589_s23, 4  ;;  %s665_s24 = int_to_ptr.vmem [resolvable:$true] %s143_s24 }
  0x11   : > { %s24_s27 = ssub.s32 %s586_s15, %s668_s26  ;;  %s430_s30 = scalar_lea.hbm %s842_s1, 128 }
  0x12   : > { %p661_p11 = pnand %p373_p10, %p845_p1  ;;  %p431_p12 = scmp.ne.s32.totalorder %s842_s1, %s430_s30 }
  0x13   : > { %p437_p5 = scmp.lt.u32.totalorder %s430_s30, %s842_s1 }
  0x14   : > { %p432_p13 = pneg %p661_p11 }
  0x16   : > { %p433_p0 = pnand %p432_p13, %p431_p12 }
  0x18   : > { %p434_p3 = pneg %p433_p0 }
  0x1a   : > { %p439_p7 = pnand %p437_p5, %p434_p3 }
  0x1c   : > { %442 = shalt.err (!%p439_p7)
}
  0x1d   : > { %s443_s8 = scalar_lea.vmem %s133_s22, 128  ;;  %p451_p2 = scmp.lt.s32.totalorder %s133_s22, %s133_s22 }
  0x1e   : > { %p444_p10 = scmp.ne.s32.totalorder %s133_s22, %s443_s8  ;;  %p452_p6 = scmp.lt.s32.totalorder %s443_s8, %s443_s8 }
  0x20   : > { %p446_p9 = pnand %p444_p10, %p432_p13  ;;  %p453_p4 = por %p452_p6, %p451_p2 }
  0x22   : > { %p447_p1 = pneg %p446_p9 }
  0x24   : > { %p454_p8 = pnand %p453_p4, %p447_p1 }
  0x26   : > { %457 = shalt.err (!%p454_p8)
}
  0x27   : > { %376 = dma.hbm_to_vmem [thread:$0]  (!%p661_p11), %s842_s1, 128, %s133_s22, [#allocation6]  }
  0x28   : > { %s458_s21 = scalar_lea.hbm %s843_s2, 128 }
  0x29   : > { %p459_p9 = scmp.ne.s32.totalorder %s843_s2, %s458_s21  ;;  %p465_p4 = scmp.lt.u32.totalorder %s458_s21, %s843_s2 }
  0x2b   : > { %p461_p2 = pnand %p459_p9, %p432_p13 }
  0x2d   : > { %p462_p1 = pneg %p461_p2 }
  0x2f   : > { %p467_p6 = pnand %p465_p4, %p462_p1 }
  0x31   : > { %470 = shalt.err (!%p467_p6)
}
  0x32   : > { %s471_s22 = scalar_lea.vmem %s665_s24, 128  ;;  %p479_p3 = scmp.lt.s32.totalorder %s665_s24, %s665_s24 }
  0x33   : > { %p472_p8 = scmp.ne.s32.totalorder %s665_s24, %s471_s22  ;;  %p480_p5 = scmp.lt.s32.totalorder %s471_s22, %s471_s22 }
  0x35   : > { %p474_p12 = pnand %p472_p8, %p432_p13  ;;  %p481_p7 = por %p480_p5, %p479_p3 }
  0x37   : > { %p475_p0 = pneg %p474_p12 }
  0x39   : > { %p482_p10 = pnand %p481_p7, %p475_p0 }
  0x3b   : > { %485 = shalt.err (!%p482_p10)
}
  0x3c   : > { %379 = dma.hbm_to_vmem [thread:$0]  (!%p661_p11), %s843_s2, 128, %s665_s24, [#allocation6]  }
  0x3d   : > { %p25_p13 = scmp.eq.s32.totalorder %s24_s27, 0  ;;  %s27_s6 = sadd.s32 1, %s582_s14 }
  0x3e   : > { %p34_p9 = scmp.ne.s32.totalorder %s582_s14, %s578_s13  ;;  %p35_p2 = scmp.eq.s32.totalorder %s586_s15, 0 }
  0x3f   : > { %s727_s25 = scalar_select %p25_p13, %s582_s14, %s27_s6  }
  0x40   : > { %p36_p1 = por %p35_p2, %p34_p9  ;;  %p852_p4 = scmp.eq.s32.totalorder %s633_s16, 1 }
  0x41   : > { %p390_p8 = scmp.lt.s32.totalorder %s586_s15, 2  ;;  %s154_s8 = sand.u32 1, %s582_s14  }
  0x42   : > { %p731_p6 = por %p852_p4, %p34_p9  ;;  %s350_s9 = sshll.u32 %s154_s8, 3 }
  0x43   : > { %s351_s10 = sshll.u32 %s586_s15, 7  ;;  %s158_s27 = scalar_lea.vmem [#allocation2], %s350_s9 }
  0x44   : > { %s741_s24 = scalar_lea.hbm %s841_s0, %s351_s10  ;;  %s165_s21 = sshll.u32 %s158_s27, 4  ;;  %s743_s21 = int_to_ptr.vmem [resolvable:$true] %s165_s21 }
  0x45   : > { %p745_p11 = pnand %p390_p8, %p36_p1  ;;  %s155_s28 = scalar_lea.sflag [#allocation3], %s154_s8 }
  0x46   : > { %s486_s29 = scalar_lea.hbm %s741_s24, 128  ;;  %s491_s4 = scalar_lea.hbm %s841_s0, 256 }
  0x47   : > { %p487_p12 = scmp.ne.s32.totalorder %s741_s24, %s486_s29  ;;  %p488_p0 = pneg %p745_p11 }
  0x48   : > { %p492_p7 = scmp.lt.u32.totalorder %s741_s24, %s841_s0  ;;  %p493_p10 = scmp.lt.u32.totalorder %s491_s4, %s486_s29 }
  0x49   : > { %p489_p3 = pnand %p488_p0, %p487_p12  ;;  %p495_p9 = scmp.lt.u32.totalorder %s486_s29, %s741_s24 }
  0x4a   : > { %p494_p13 = por %p493_p10, %p492_p7 }
  0x4b   : > { %p490_p5 = pneg %p489_p3 }
  0x4c   : > { %p496_p2 = por %p495_p9, %p494_p13 }
  0x4e   : > { %p497_p1 = pnand %p496_p2, %p490_p5 }
  0x50   : > { %500 = shalt.err (!%p497_p1)
}
  0x51   : > { %s501_s8 = scalar_lea.vmem %s743_s21, 128  ;;  %s590_s9 = smov [#allocation2]  }
  0x52   : > { %p502_p4 = scmp.ne.s32.totalorder %s743_s21, %s501_s8  ;;  %s506_s10 = sshll.u32 %s590_s9, 4  ;;  %s507_s10 = int_to_ptr.vmem [resolvable:$false] %s506_s10 }
  0x53   : > { %s508_s11 = scalar_lea.vmem %s507_s10, 256  ;;  %p509_p3 = scmp.lt.s32.totalorder %s743_s21, %s507_s10 }
  0x54   : > { %p504_p8 = pnand %p502_p4, %p488_p0  ;;  %p510_p7 = scmp.lt.s32.totalorder %s508_s11, %s501_s8 }
  0x56   : > { %p505_p12 = pneg %p504_p8  ;;  %p511_p10 = por %p510_p7, %p509_p3 }
  0x58   : > { %p512_p13 = pnand %p511_p10, %p505_p12 }
  0x5a   : > { %515 = shalt.err (!%p512_p13)
}
  0x5b   : > { %383 = dma.hbm_to_vmem [thread:$0]  (!%p745_p11), %s741_s24, 128, %s743_s21, %s155_s28  }
  0x5c   : > { %p855_p5 = scmp.ne.s32.totalorder %s850_s20, 0 }
  0x5d   : > { %s777_s17 = sand.u32 (!%p855_p5), 1, %s578_s13   ;;  %p856_p0 = scmp.ne.s32.totalorder (!%p855_p5), %s848_s18, 0 }
  0x5e   : > { %174 = sbr.rel (%p855_p5) target bundleno = 455 (0x1c7), region = 32  ;;  %s353_s27 = sshll.u32 (!%p855_p5), %s777_s17, 3 }
  0x5f   : > { %s177_s29 = scalar_lea.sflag (!%p855_p5), [#allocation3], %s777_s17  ;;  %s180_s30 = scalar_lea.vmem (!%p855_p5), [#allocation2], %s353_s27 }
  0x65   : > { %561 = dma.done.wait (%p856_p0), %s177_s29, 128  }
  0x66   : > { %563 = vsyncadd (%p856_p0), %s177_s29, 4294967168  ;;  %p857_p11 = scmp.eq.s32.totalorder %s633_s16, 0 }
  0x68   : > { %565 = dma.done.wait (%p857_p11), [#allocation6], 256   ;;  %p858_p9 = pmov %p857_p11 }
  0x69   : > { %v211_v0 = vld [vmem:[%s180_s30] sm:$0xff]  ;;  %v236_v21 = vld [vmem:[#allocation5] sm:$0xff]  ;;  %v237_v23 = vld [vmem:[#allocation7] sm:$0xff]  ;;  %s358_s18 = sshll.u32 %s633_s16, 7  ;;  %s210_s20 = scalar_lea.vmem [#allocation8], %s353_s27 }
  0x6a   : > { %567 = vsyncadd (%p858_p9), [#allocation6], 4294967040  ;;  %212 = vadd.xlane.f32.xlu0 %v211_v0  ;;  %s256_s24 = sshll.u32 %s210_s20, 4  ;;  %s797_s28 = scalar_lea.hbm %s844_s3, %s358_s18  ;;  %s799_s24 = int_to_ptr.vmem [resolvable:$true] %s256_s24 }
  0x6b   : > { %s243_s22 = scalar_lea.sflag [#allocation4], %s777_s17  ;;  %s516_s4 = scalar_lea.vmem %s799_s24, 128 }
  0x6c   : > { %p517_p2 = scmp.ne.s32.totalorder %s799_s24, %s516_s4  ;;  %s591_s16 = smov [#allocation8]  }
  0x6d   : > { %s520_s5 = sshll.u32 %s591_s16, 4  ;;  %s521_s5 = int_to_ptr.vmem [resolvable:$false] %s520_s5 }
  0x6e   : > { %p518_p1 = pnand %p517_p2, %p731_p6  ;;  %s522_s6 = scalar_lea.vmem %s521_s5, 256 }
  0x6f   : > { %p523_p8 = scmp.lt.s32.totalorder %s799_s24, %s521_s5  ;;  %p524_p12 = scmp.lt.s32.totalorder %s522_s6, %s516_s4 }
  0x70   : > { %p519_p4 = pneg %p518_p1 }
  0x71   : > { %p525_p3 = por %p524_p12, %p523_p8 }
  0x73   : > { %p526_p7 = pnand %p525_p3, %p519_p4 }
  0xf7   : > { %v213_v1 = vpop.xlane.xlu0 %212 }
  0xf8   : > { %v214_v2 = vrot.slane %v213_v1, 4 }
  0xfa   : > { %v215_v3 = vadd.f32 %v214_v2, %v213_v1 }
  0xfc   : > { %v216_v4 = vrot.slane %v215_v3, 2 }
  0xfe   : > { %v217_v5 = vadd.f32 %v216_v4, %v215_v3 }
 0x100   : > { %v218_v6 = vrot.slane %v217_v5, 1 }
 0x102   : > { %v219_v7 = vadd.f32 %v218_v6, %v217_v5 }
 0x104   : > { %v221_v8 = vmul.f32 0.0009765625, %v219_v7 }
 0x106   : > { %v222_v9 = vsub.f32 %v211_v0, %v221_v8 }
 0x108   : > { %v223_v10 = vmul.f32 %v222_v9, %v222_v9 }
 0x10a   : > { %224 = vadd.xlane.f32.xlu0 %v223_v10 }
 0x197   : > { %v225_v11 = vpop.xlane.xlu0 %224 }
 0x198   : > { %v226_v12 = vrot.slane %v225_v11, 4 }
 0x19a   : > { %v227_v13 = vadd.f32 %v226_v12, %v225_v11 }
 0x19c   : > { %v228_v14 = vrot.slane %v227_v13, 2 }
 0x19e   : > { %v229_v15 = vadd.f32 %v228_v14, %v227_v13 }
 0x1a0   : > { %v230_v16 = vrot.slane %v229_v15, 1 }
 0x1a2   : > { %v231_v17 = vadd.f32 %v230_v16, %v229_v15 }
 0x1a4   : > { %v233_v18 = vmul.f32 0.0009765625, %v231_v17 }
 0x1a6   : > { %v234_v19 = vadd.f32 1e-05, %v233_v18 }
 0x1a8   : > { %428 = vrsqrt.f32 %v234_v19 }
 0x1b2   : > { %v429_v20 = vpop.eup %428 }
 0x1b3   : > { %v238_v22 = vmul.f32 %v429_v20, %v222_v9 }
 0x1b5   : > { %v239_v24 = vmul.f32 %v238_v22, %v236_v21 }
 0x1b7   : > { %v240_v25 = vadd.f32 %v239_v24, %v237_v23 }
 0x1b9   : > { %241 = vst [vmem:[%s210_s20] sm:$0xff] %v240_v25 }
 0x1ba   : > { %529 = shalt.err (!%p526_p7)
}
 0x1bb   : > { %s530_s8 = scalar_lea.hbm %s797_s28, 128  ;;  %s534_s11 = scalar_lea.hbm %s844_s3, 256 }
 0x1bc   : > { %p531_p10 = scmp.ne.s32.totalorder %s797_s28, %s530_s8  ;;  %p535_p0 = scmp.lt.u32.totalorder %s797_s28, %s844_s3 }
 0x1bd   : > { %p536_p11 = scmp.lt.u32.totalorder %s534_s11, %s530_s8  ;;  %p538_p2 = scmp.lt.u32.totalorder %s530_s8, %s797_s28 }
 0x1be   : > { %p532_p13 = pnand %p531_p10, %p731_p6 }
 0x1bf   : > { %p537_p9 = por %p536_p11, %p535_p0 }
 0x1c0   : > { %p533_p5 = pneg %p532_p13 }
 0x1c1   : > { %p539_p1 = por %p538_p2, %p537_p9 }
 0x1c3   : > { %p540_p4 = pnand %p539_p1, %p533_p5 }
 0x1c5   : > { %543 = shalt.err (!%p540_p4)
}
 0x1c6   : > { %371 = dma.vmem_to_hbm [thread:$0]  (%p731_p6), %s799_s24, 128, %s797_s28, %s243_s22  }
 0x1c7 PF: > { %s268_s29 = sand.u32 1, %s574_s12   ;;  %p859_p8 = scmp.ne.s32.totalorder %s849_s19, 0 }
 0x1c8   : > { %p860_p12 = scmp.ge.s32.totalorder %s586_s15, 2  ;;  %s269_s30 = scalar_lea.sflag [#allocation4], %s268_s29 }
 0x1ca   : > { %p385_p3 = pnand %p860_p12, %p859_p8 }
 0x1cc   : > { %569 = dma.done.wait (!%p385_p3), %s269_s30, 128  }
 0x1cd   : > { %571 = vsyncadd (!%p385_p3), %s269_s30, 4294967168  ;;  %p17_p7 = scmp.ge.s32.totalorder %s668_s26, 4   ;;  %s861_s12 = smov %s578_s13 }
 0x1ce   : > { %s862_s13 = smov %s582_s14  ;;  %s863_s14 = smov %s727_s25 }
 0x1cf   : > { %s864_s15 = smov %s668_s26  ;;  %19 = sbr.rel (!%p17_p7) target bundleno = 6 (0x6), region = 85 }
 0x1d6   :  { %274 = vsyncpa [#allocation3], 1 }
 0x1d7   :  { %276 = vsyncpa [#allocation3 + $0x1], 1 }
 0x1d8   :  { %277 = vsyncpa [#allocation6], 1 }
 0x1d9   :  { %278 = vsyncpa [#allocation4], 1 }
 0x1da   :  { %280 = vsyncpa [#allocation4 + $0x1], 1 }

</bundles_post_ra>
